<compile_context>
chip_gen: v7x
topology: tpu7x:2x2x1
jax: 0.10.0
libtpu: 0.0.40
codegen_flags: <defaults>
</compile_context>

<pallas_src>
import functools

import jax
import jax.numpy as jnp
from jax.experimental import pallas as pl
from jax.experimental.pallas import tpu as pltpu


def _shift_along_lanes(x, d, length):
    """s[:, l] = x[:, l + d] if 0 <= l + d < length else 0  (static d, zero halo)."""
    c = x.shape[0]
    if d == 0:
        return x
    if abs(d) >= length:
        return jnp.zeros((c, length), x.dtype)
    if d > 0:
        return jnp.concatenate([x[:, d:], jnp.zeros((c, d), x.dtype)], axis=1)
    return jnp.concatenate([jnp.zeros((c, -d), x.dtype), x[:, :length + d]], axis=1)


def depthconv_kernel(x_ref, dw_ref, pw_ref, b_ref, o_ref, dw_scr,
                     *, use_mxu, mxu_operand_dtype):
    """One grid step = (batch n, L-tile j).

    x_ref : (1, C_in, L)      full-length input slab for batch n (NCL layout)
    dw_ref: (C_in, K)         depthwise taps, channel on sublanes
    pw_ref: (C_out, C_in)     pointwise 1x1 weight
    b_ref : (C_out, 1)        pointwise bias (broadcast along lanes)
    o_ref : (1, C_out, TILE_L) output tile (NCL layout, lane-dense)
    dw_scr: (C_in, L) f32     VMEM scratch holding the depthwise result
    """
    c_in, seq_len = x_ref.shape[1], x_ref.shape[2]
    c_out, tile_l = o_ref.shape[1], o_ref.shape[2]
    ksize = dw_ref.shape[1]
    pad = ksize // 2
    j = pl.program_id(1)

    # ---- depthwise conv over the full slab, once per batch (tile j == 0) ----
    @pl.when(j == 0)
    def _():
        x = x_ref[0].astype(jnp.float32)                          # (C_in, L)
        acc = x * dw_ref[:, pad:pad + 1].astype(jnp.float32)      # center tap
        for t in range(ksize):                                    # K tiny & static
            d = t - pad
            if d == 0:
                continue
            acc = acc + (_shift_along_lanes(x, d, seq_len)
                         * dw_ref[:, t:t + 1].astype(jnp.float32))
        dw_scr[...] = acc

    # ---- pointwise 1x1 conv + bias + ReLU on one lane-aligned L tile --------
    if tile_l == seq_len:
        yt = dw_scr[...]                                          # (C_in, L)
    else:
        base = pl.multiple_of(j * tile_l, tile_l)                 # tile_l % 128 == 0
        yt = dw_scr[:, pl.ds(base, tile_l)]                       # (C_in, TILE_L)

    if use_mxu:
        # (C_out, C_in) @ (C_in, TILE_L) on the MXU.  Pass bf16 operands via
        # mxu_operand_dtype when the precision budget allows (v5e/v6e/v7x MXU
        # are bf16-native).
        out = jnp.dot(pw_ref[...].astype(mxu_operand_dtype),
                      yt.astype(mxu_operand_dtype),
                      preferred_element_type=jnp.float32)
    else:
        # Tiny channel counts: unrolled VPU broadcast-MAC, skips the MXU/MRF.
        out = jnp.zeros((c_out, tile_l), jnp.float32)
        for ci in range(c_in):
            out = out + pw_ref[:, ci:ci + 1].astype(jnp.float32) * yt[ci:ci + 1, :]

    # Single fused bias + ReLU + cast epilogue, one lane-dense store.
    out = out + b_ref[...].astype(jnp.float32)
    o_ref[0] = jnp.maximum(out, 0.0).astype(o_ref.dtype)


def _pick_tile_l(seq_len):
    """Largest convenient L tile; must be a multiple of 128 or the full L."""
    if seq_len % 128 != 0:
        return seq_len
    for cand in (1024, 512, 256, 128):
        if seq_len % cand == 0:
            return cand
    return seq_len


def _round_up(v, m):
    return -(-v // m) * m


def _padded_bytes(shape, itemsize=4):
    """f32 VMEM footprint of a tile after (8, 128) sublane/lane padding."""
    s = list(shape)
    while len(s) < 2:
        s.insert(0, 1)
    s[-1] = _round_up(s[-1], 128)
    s[-2] = _round_up(s[-2], 8)
    n = 1
    for d in s:
        n *= d
    return n * itemsize


def depth_conv(x, dw_weight, pw_weight, pw_bias, *, ksize,
               mxu_operand_dtype=jnp.float32):
    """x: (N, C_in, L) -> (N, C_out, L)  (PyTorch NCL layout, no transposes).

    dw_weight: (C_in, 1, K)    depthwise Conv1d weight (groups=C_in, no bias)
    pw_weight: (C_out, C_in, 1) pointwise 1x1 Conv1d weight
    pw_bias:   (C_out,) or None
    """
    N, C_in, L = x.shape
    C_out = pw_weight.shape[0]
    if ksize % 2 != 1:
        raise ValueError(
            "DepthConv Pallas kernel supports odd conv_kernel_size only "
            "(even K with padding=K//2 changes the output length in PyTorch).")

    # Weight reshapes only — no data-tensor layout work in the wrapper.
    dw = dw_weight[:, 0, :]                                       # (C_in, K)
    pw = pw_weight[:, :, 0]                                       # (C_out, C_in)
    b = (jnp.zeros((C_out,), x.dtype) if pw_bias is None else pw_bias)
    b = b.reshape(C_out, 1)                                       # (C_out, 1)

    tile_l = _pick_tile_l(L)
    n_lt = L // tile_l
    # MXU only pays off once the channel extents are non-trivial; otherwise an
    # unrolled VPU MAC avoids the matmul-unit push/pop latency entirely.
    use_mxu = (C_in > 16) or (C_in * C_out >= 4096)

    # Explicit VMEM budget: 2x double-buffered input slab + scratch + 2x output
    # tile + weights, with headroom.  Capped so it is valid on v7x (64 MiB).
    needed = (3 * _padded_bytes((C_in, L))
              + 2 * _padded_bytes((C_out, tile_l))
              + _padded_bytes((C_in, ksize))
              + _padded_bytes((C_out, C_in))
              + _padded_bytes((C_out, 1)))
    vmem_limit = int(min(48 * 1024 * 1024, max(4 * needed, 16 * 1024 * 1024)))

    kernel = functools.partial(depthconv_kernel, use_mxu=use_mxu,
                               mxu_operand_dtype=mxu_operand_dtype)

    return pl.pallas_call(
        kernel,
        out_shape=jax.ShapeDtypeStruct((N, C_out, L), x.dtype),
        grid_spec=pltpu.PrefetchScalarGridSpec(
            num_scalar_prefetch=0,
            grid=(N, n_lt),
            in_specs=[
                # Input slab: block index independent of j -> fetched once per n.
                pl.BlockSpec((1, C_in, L), lambda n, j: (n, 0, 0)),
                pl.BlockSpec((C_in, ksize), lambda n, j: (0, 0)),
                pl.BlockSpec((C_out, C_in), lambda n, j: (0, 0)),
                pl.BlockSpec((C_out, 1), lambda n, j: (0, 0)),
            ],
            out_specs=pl.BlockSpec((1, C_out, tile_l), lambda n, j: (n, 0, j)),
            scratch_shapes=[pltpu.VMEM((C_in, L), jnp.float32)],
        ),
        compiler_params=pltpu.CompilerParams(
            dimension_semantics=("parallel", "arbitrary"),
            vmem_limit_bytes=vmem_limit),
    )(x, dw, pw, b)


def depth_conv_ref(x, dw_weight, pw_weight, pw_bias, *, ksize):
    """Pure-JAX reference matching PyTorch F.conv1d semantics."""
    pad = ksize // 2
    y = jax.lax.conv_general_dilated(
        x, dw_weight, window_strides=(1,), padding=[(pad, pad)],
        dimension_numbers=("NCH", "OIH", "NCH"),
        feature_group_count=x.shape[1])
    z = jax.lax.conv_general_dilated(
        y, pw_weight, window_strides=(1,), padding=[(0, 0)],
        dimension_numbers=("NCH", "OIH", "NCH"))
    z = z + pw_bias[None, :, None]
    return jnp.maximum(z, 0.0)


if __name__ == "__main__":
    key = jax.random.PRNGKey(0)
    k_x, k_dw, k_pw, k_b = jax.random.split(key, 4)

    # Small shapes consistent with the module: Conv1d input is (N, C_in, L).
    N, C_in, C_out, L, K = 2, 4, 8, 16, 3

    x = jax.random.normal(k_x, (N, C_in, L), dtype=jnp.float32)
    dw_weight = jax.random.normal(k_dw, (C_in, 1, K), dtype=jnp.float32) * 0.3
    pw_weight = jax.random.normal(k_pw, (C_out, C_in, 1), dtype=jnp.float32) * 0.3
    pw_bias = jax.random.normal(k_b, (C_out,), dtype=jnp.float32) * 0.1

    out = depth_conv(x, dw_weight, pw_weight, pw_bias, ksize=K)
    out = jax.block_until_ready(out)

    ref = depth_conv_ref(x, dw_weight, pw_weight, pw_bias, ksize=K)
    assert out.shape == (N, C_out, L)
    assert jnp.allclose(out, ref, atol=1e-5, rtol=1e-5), "mismatch vs reference"

    print("KERNEL_OK")
</pallas_src>

<mosaic_0001>
module attributes {stable_mosaic.version = 11 : i64} {
  func.func @depthconv_kernel(%arg0: i32, %arg1: i32, %arg2: memref<1x4x16xf32, #tpu.memory_space<vmem>>, %arg3: memref<4x3xf32, #tpu.memory_space<vmem>>, %arg4: memref<8x4xf32, #tpu.memory_space<vmem>>, %arg5: memref<8x1xf32, #tpu.memory_space<vmem>>, %arg6: memref<1x8x16xf32, #tpu.memory_space<vmem>>, %arg7: memref<4x16xf32, #tpu.memory_space<vmem>>) attributes {dimension_semantics = [#tpu.dimension_semantics<parallel>, #tpu.dimension_semantics<arbitrary>], iteration_bounds = array<i64: 2, 1>, scalar_prefetch = 0 : i64, scratch_operands = 1 : i64, tpu.core_type = #tpu.core_type<tc>, window_params = [{transform_indices = @transform_0, window_bounds = array<i64: 1, 4, 16>}, {pipeline_mode = #tpu.pipeline_mode<synchronous>, transform_indices = @transform_1, window_bounds = array<i64: 4, 3>}, {pipeline_mode = #tpu.pipeline_mode<synchronous>, transform_indices = @transform_2, window_bounds = array<i64: 8, 4>}, {pipeline_mode = #tpu.pipeline_mode<synchronous>, transform_indices = @transform_3, window_bounds = array<i64: 8, 1>}, {transform_indices = @transform_4, window_bounds = array<i64: 1, 8, 16>}]} {
    %c0_i32 = arith.constant 0 : i32
    %0 = arith.cmpi eq, %arg1, %c0_i32 : i32
    %1 = arith.extui %0 : i1 to i32
    %c0_i32_0 = arith.constant 0 : i32
    %2 = arith.cmpi ne, %1, %c0_i32_0 : i32
    scf.if %2 {
      %c0_13 = arith.constant 0 : index
      %c0_14 = arith.constant 0 : index
      %c0_15 = arith.constant 0 : index
      %37 = vector.load %arg2[%c0_13, %c0_14, %c0_15] : memref<1x4x16xf32, #tpu.memory_space<vmem>>, vector<1x4x16xf32>
      %38 = vector.shape_cast %37 : vector<1x4x16xf32> to vector<4x16xf32>
      %c0_16 = arith.constant 0 : index
      %c1_17 = arith.constant 1 : index
      %39 = vector.load %arg3[%c0_16, %c1_17] : memref<4x3xf32, #tpu.memory_space<vmem>>, vector<4x1xf32>
      %40 = vector.broadcast %39 : vector<4x1xf32> to vector<4x16xf32>
      %41 = arith.mulf %38, %40 : vector<4x16xf32>
      %cst_18 = arith.constant 0.000000e+00 : f32
      %42 = vector.broadcast %cst_18 : f32 to vector<4x1xf32>
      %43 = vector.extract_strided_slice %38 {offsets = [0, 0], sizes = [4, 15], strides = [1, 1]} : vector<4x16xf32> to vector<4x15xf32>
      %44 = tpu.concatenate %42, %43 in 1 : vector<4x1xf32>, vector<4x15xf32> -> vector<4x16xf32>
      %c0_19 = arith.constant 0 : index
      %c0_20 = arith.constant 0 : index
      %45 = vector.load %arg3[%c0_19, %c0_20] : memref<4x3xf32, #tpu.memory_space<vmem>>, vector<4x1xf32>
      %46 = vector.broadcast %45 : vector<4x1xf32> to vector<4x16xf32>
      %47 = arith.mulf %44, %46 : vector<4x16xf32>
      %48 = arith.addf %41, %47 : vector<4x16xf32>
      %49 = vector.extract_strided_slice %38 {offsets = [0, 1], sizes = [4, 15], strides = [1, 1]} : vector<4x16xf32> to vector<4x15xf32>
      %cst_21 = arith.constant 0.000000e+00 : f32
      %50 = vector.broadcast %cst_21 : f32 to vector<4x1xf32>
      %51 = tpu.concatenate %49, %50 in 1 : vector<4x15xf32>, vector<4x1xf32> -> vector<4x16xf32>
      %c0_22 = arith.constant 0 : index
      %c2_23 = arith.constant 2 : index
      %52 = vector.load %arg3[%c0_22, %c2_23] : memref<4x3xf32, #tpu.memory_space<vmem>>, vector<4x1xf32>
      %53 = vector.broadcast %52 : vector<4x1xf32> to vector<4x16xf32>
      %54 = arith.mulf %51, %53 : vector<4x16xf32>
      %55 = arith.addf %48, %54 : vector<4x16xf32>
      %c0_24 = arith.constant 0 : index
      %c0_25 = arith.constant 0 : index
      %56 = vector.load %arg7[%c0_24, %c0_25] : memref<4x16xf32, #tpu.memory_space<vmem>>, vector<4x16xf32>
      tpu.vector_store %arg7[%c0_24, %c0_25], %55 {strides = array<i32>} : memref<4x16xf32, #tpu.memory_space<vmem>>, vector<4x16xf32>,
    } else {
    }
    %c0 = arith.constant 0 : index
    %c0_1 = arith.constant 0 : index
    %3 = vector.load %arg7[%c0, %c0_1] : memref<4x16xf32, #tpu.memory_space<vmem>>, vector<4x16xf32>
    %cst = arith.constant 0.000000e+00 : f32
    %4 = vector.broadcast %cst : f32 to vector<8x16xf32>
    %c0_2 = arith.constant 0 : index
    %c0_3 = arith.constant 0 : index
    %5 = vector.load %arg4[%c0_2, %c0_3] : memref<8x4xf32, #tpu.memory_space<vmem>>, vector<8x1xf32>
    %6 = vector.extract_strided_slice %3 {offsets = [0, 0], sizes = [1, 16], strides = [1, 1]} : vector<4x16xf32> to vector<1x16xf32>
    %7 = vector.broadcast %5 : vector<8x1xf32> to vector<8x16xf32>
    %8 = vector.broadcast %6 : vector<1x16xf32> to vector<8x16xf32>
    %9 = arith.mulf %7, %8 : vector<8x16xf32>
    %10 = arith.addf %4, %9 : vector<8x16xf32>
    %c0_4 = arith.constant 0 : index
    %c1 = arith.constant 1 : index
    %11 = vector.load %arg4[%c0_4, %c1] : memref<8x4xf32, #tpu.memory_space<vmem>>, vector<8x1xf32>
    %12 = vector.extract_strided_slice %3 {offsets = [1, 0], sizes = [1, 16], strides = [1, 1]} : vector<4x16xf32> to vector<1x16xf32>
    %13 = vector.broadcast %11 : vector<8x1xf32> to vector<8x16xf32>
    %14 = vector.broadcast %12 : vector<1x16xf32> to vector<8x16xf32>
    %15 = arith.mulf %13, %14 : vector<8x16xf32>
    %16 = arith.addf %10, %15 : vector<8x16xf32>
    %c0_5 = arith.constant 0 : index
    %c2 = arith.constant 2 : index
    %17 = vector.load %arg4[%c0_5, %c2] : memref<8x4xf32, #tpu.memory_space<vmem>>, vector<8x1xf32>
    %18 = vector.extract_strided_slice %3 {offsets = [2, 0], sizes = [1, 16], strides = [1, 1]} : vector<4x16xf32> to vector<1x16xf32>
    %19 = vector.broadcast %17 : vector<8x1xf32> to vector<8x16xf32>
    %20 = vector.broadcast %18 : vector<1x16xf32> to vector<8x16xf32>
    %21 = arith.mulf %19, %20 : vector<8x16xf32>
    %22 = arith.addf %16, %21 : vector<8x16xf32>
    %c0_6 = arith.constant 0 : index
    %c3 = arith.constant 3 : index
    %23 = vector.load %arg4[%c0_6, %c3] : memref<8x4xf32, #tpu.memory_space<vmem>>, vector<8x1xf32>
    %24 = vector.extract_strided_slice %3 {offsets = [3, 0], sizes = [1, 16], strides = [1, 1]} : vector<4x16xf32> to vector<1x16xf32>
    %25 = vector.broadcast %23 : vector<8x1xf32> to vector<8x16xf32>
    %26 = vector.broadcast %24 : vector<1x16xf32> to vector<8x16xf32>
    %27 = arith.mulf %25, %26 : vector<8x16xf32>
    %28 = arith.addf %22, %27 : vector<8x16xf32>
    %c0_7 = arith.constant 0 : index
    %c0_8 = arith.constant 0 : index
    %29 = vector.load %arg5[%c0_7, %c0_8] : memref<8x1xf32, #tpu.memory_space<vmem>>, vector<8x1xf32>
    %30 = vector.broadcast %29 : vector<8x1xf32> to vector<8x16xf32>
    %31 = arith.addf %28, %30 : vector<8x16xf32>
    %cst_9 = arith.constant 0.000000e+00 : f32
    %32 = vector.broadcast %cst_9 : f32 to vector<8x16xf32>
    %33 = arith.maximumf %31, %32 : vector<8x16xf32>
    %c0_10 = arith.constant 0 : index
    %c0_11 = arith.constant 0 : index
    %c0_12 = arith.constant 0 : index
    %34 = vector.load %arg6[%c0_10, %c0_11, %c0_12] : memref<1x8x16xf32, #tpu.memory_space<vmem>>, vector<1x8x16xf32>
    %35 = vector.shape_cast %34 : vector<1x8x16xf32> to vector<8x16xf32>
    %36 = vector.shape_cast %33 : vector<8x16xf32> to vector<1x8x16xf32>
    tpu.vector_store %arg6[%c0_10, %c0_11, %c0_12], %36 {strides = array<i32>} : memref<1x8x16xf32, #tpu.memory_space<vmem>>, vector<1x8x16xf32>,
    return
  }
  func.func @transform_0(%arg0: i32, %arg1: i32) -> (i32, i32, i32) {
    %c0_i32 = arith.constant 0 : i32
    %c0_i32_0 = arith.constant 0 : i32
    %c0_i32_1 = arith.constant 0 : i32
    return %arg0, %c0_i32, %c0_i32_0 : i32, i32, i32
  }
  func.func @transform_1(%arg0: i32, %arg1: i32) -> (i32, i32) {
    %c0_i32 = arith.constant 0 : i32
    %c0_i32_0 = arith.constant 0 : i32
    %c0_i32_1 = arith.constant 0 : i32
    return %c0_i32, %c0_i32_0 : i32, i32
  }
  func.func @transform_2(%arg0: i32, %arg1: i32) -> (i32, i32) {
    %c0_i32 = arith.constant 0 : i32
    %c0_i32_0 = arith.constant 0 : i32
    %c0_i32_1 = arith.constant 0 : i32
    return %c0_i32, %c0_i32_0 : i32, i32
  }
  func.func @transform_3(%arg0: i32, %arg1: i32) -> (i32, i32) {
    %c0_i32 = arith.constant 0 : i32
    %c0_i32_0 = arith.constant 0 : i32
    %c0_i32_1 = arith.constant 0 : i32
    return %c0_i32, %c0_i32_0 : i32, i32
  }
  func.func @transform_4(%arg0: i32, %arg1: i32) -> (i32, i32, i32) {
    %c0_i32 = arith.constant 0 : i32
    %c0_i32_0 = arith.constant 0 : i32
    return %arg0, %c0_i32, %arg1 : i32, i32, i32
  }
}

</mosaic_0001>

<bundles_post_ra>
// kernel: tpu_custom_call.1
= control target key start
LH: loop header
LB: loop body
LE: loop exit
PB: predicated region body
PF: predicated region fallthrough
CT: control target
= control target key end

     0   :  { %9 = vsyncpa [#allocation4], 0  ;;  %s693_s0 = inlined_call_operand.vmem [shape: f32[2,4,16], index: 0, kind: input, shape index: {}]   ;;  %s694_s1 = inlined_call_operand.vmem [shape: f32[4,3], index: 1, kind: input, shape index: {}]   ;;  %s695_s2 = inlined_call_operand.vmem [shape: f32[8,4], index: 2, kind: input, shape index: {}]   ;;  %s696_s3 = inlined_call_operand.vmem [shape: f32[8,1], index: 3, kind: input, shape index: {}]   ;;  %s697_s4 = inlined_call_operand.hbm [shape: f32[2,8,16], index: 4, kind: output, shape index: {}]  }
   0x1   :  { %11 = vsyncpa [#allocation4 + $0x1], 0  ;;  %s572_s15 = smov 0   ;;  %s574_s16 = smov 0  }
   0x2   :  { %s576_s17 = smov 0   ;;  %s578_s18 = smov 0  }
   0x3   :  { %s580_s19 = smov 0   ;;  %s582_s20 = smov 0  }
   0x4 LB: > { %s380_s21 = sadd.s32 4294967295, %s538_s20   ;;  %s381_s22 = sadd.s32 4294967294, %s538_s20   ;;  %s538_s20 = sphi %s582_s20, %s17_s20   ;;  %s534_s19 = sphi %s580_s19, %s704_s19   ;;  %s530_s18 = sphi %s578_s18, %s703_s18   ;;  %s526_s17 = sphi %s576_s17, %s702_s17   ;;  %s522_s16 = sphi %s574_s16, %s701_s16   ;;  %s518_s15 = sphi %s572_s15, %s700_s15  }
   0x5   : > { %s29_s23 = sadd.s32 1, %s534_s19  ;;  %s127_s24 = sadd.s32 1, %s526_s17 }
   0x6   : > { %p31_p0 = scmp.ge.s32.totalorder %s29_s23, 2  ;;  %p137_p1 = scmp.ne.s32.totalorder %s526_s17, %s522_s16 }
   0x7   : > { %p138_p2 = scmp.eq.s32.totalorder %s380_s21, 1  ;;  %p143_p3 = scmp.ne.s32.totalorder %s522_s16, %s518_s15 }
   0x8   : > { %s706_s23 = smov (%p31_p0, %s29_s23), 0  ;;  %p144_p5 = scmp.eq.s32.totalorder %s381_s22, 1 }
   0x9   : > { %p612_p4 = por %p138_p2, %p137_p1  ;;  %s122_s26 = ssub.s32 %s534_s19, %s706_s23 }
   0xa   : > { %p384_p6 = scmp.ge.s32.totalorder %s538_s20, 1  ;;  %p125_p7 = scmp.eq.s32.totalorder %s122_s26, 0 }
   0xb   : > { %p619_p8 = por %p144_p5, %p143_p3  ;;  %p178_p9 = scmp.lt.s32.totalorder %s538_s20, 3 }
   0xc   : > { %s625_s28 = scalar_select %p125_p7, %s526_s17, %s127_s24  }
   0xd   : > { %p179_p10 = pnand %p384_p6, %p178_p9 }
   0xe   : > { %v212_v0 = vld [vmem:[%s694_s1] sm:$0xf] (!%p179_p10)  ;;  %v540_v1 = vmov (!%p179_p10), 2   ;;  %v541_v2 = vmov (!%p179_p10), 1   ;;  %p203_p11 = scmp.lt.s32.totalorder (!%p179_p10), %s530_s18, 1  ;;  %v542_v3 = vmov (!%p179_p10), 0   ;;  %v251_v19 = vlaneseq (!%p179_p10) }
   0xf   : > { %182 = sbr.rel (%p179_p10) target bundleno = 193 (0xc1), region = 36  ;;  %454 = vset.pattern.permute.xlu1 (!%p179_p10), %v540_v1  ;;  %452 = vset.pattern.permute.xlu0 (!%p179_p10), %v541_v2  ;;  %v245_v5 = vld [vmem:[%s695_s2] sm:$0xff] (!%p179_p10)  ;;  %s543_s12 = smov (!%p179_p10), 1   ;;  %v545_v6 = vmov (!%p179_p10), 3   ;;  %vm223_vm0 = vcmask (!%p179_p10), 7168   ;;  %vm234_vm1 = vcmask (!%p179_p10), 121856  }
  0x10   : > { %237 = vperm.xlu1 (!%p179_p10), %454, %v212_v0   ;;  %215 = vperm.xlu0 (!%p179_p10), %452, %v212_v0   ;;  %s544_s13 = smov (!%p179_p10), 127   ;;  %v287_v7 = vld [vmem:[%s696_s3] sm:$0xff] (!%p179_p10)  ;;  %vm242_vm2 = vcmask (!%p179_p10), 125952   ;;  %v252_v21 = vshrl.u32 (!%p179_p10), %v251_v19, 7  ;;  %s200_s22 = sand.u32 (!%p179_p10), 1, %s522_s16   ;;  %vm295_vm3 = vcmask (!%p179_p10), 130048  }
  0x11   : > { %s385_s24 = sshll.u32 (!%p179_p10), %s200_s22, 3  ;;  %s388_s26 = sshll.u32 (!%p179_p10), %s530_s18, 7 }
  0x12   : > { %v253_v22 = vsub.s32 (!%p179_p10), 0, %v252_v21  ;;  %v263_v23 = vsub.s32 (!%p179_p10), 1, %v252_v21  ;;  %v273_v24 = vsub.s32 (!%p179_p10), 2, %v252_v21  ;;  %v283_v27 = vsub.s32 (!%p179_p10), 3, %v252_v21  ;;  %s202_s29 = scalar_lea.vmem (!%p179_p10), [#allocation3], %s385_s24  ;;  %s646_s7 = scalar_lea.hbm (!%p179_p10), %s697_s4, %s388_s26 }
  0x13   : > { %s312_s30 = sshll.u32 (!%p179_p10), %s202_s29, 4  ;;  %s298_s8 = scalar_lea.sflag (!%p179_p10), [#allocation4], %s200_s22  ;;  %s648_s30 = int_to_ptr.vmem [resolvable:$true] %s312_s30 }
  0x14   : > { %453 = vset.pattern.permute.xlu0 (!%p179_p10), %v542_v3  ;;  %455 = vset.pattern.permute.xlu1 (!%p179_p10), %v541_v2 }
  0x15   : > { %226 = vperm.xlu0 (!%p179_p10), %453, %v212_v0  }
  0x16   : > { %s204_s5 = scalar_select %p203_p11, %s530_s18, 1 }
  0x17   : > { %s546_s18 = smov [#allocation3]  }
  0x18   : > { %s386_s6 = sshll.u32 %s204_s5, 2  ;;  %s464_s10 = sshll.u32 %s546_s18, 4  ;;  %s465_s10 = int_to_ptr.vmem [resolvable:$false] %s464_s10 }
  0x19   : > { %s206_s9 = scalar_lea.vmem %s693_s0, %s386_s6  ;;  %248 = vperm.xlu0 %453, %v245_v5   ;;  %s466_s11 = scalar_lea.vmem %s465_s10, 256 }
  0x1a   : > { %v211_v4 = vld [vmem:[%s206_s9] sm:$0xf]  ;;  %s460_s9 = scalar_lea.vmem %s648_s30, 128  ;;  %p467_p1 = scmp.lt.s32.totalorder %s648_s30, %s465_s10 }
  0x1b   : > { %220 = vrot.lane.b32.xlu1 %v211_v4, %s543_s12  ;;  %p461_p12 = scmp.ne.s32.totalorder %s648_s30, %s460_s9  ;;  %p468_p2 = scmp.lt.s32.totalorder %s466_s11, %s460_s9 }
  0x1d   : > { %456 = vset.pattern.permute.xlu0 %v540_v1  ;;  %p462_p13 = pnand %p461_p12, %p612_p4  ;;  %p469_p3 = por %p468_p2, %p467_p1 }
  0x1e   : > { %268 = vperm.xlu0 %456, %v245_v5  }
  0x1f   : > { %231 = vrot.lane.b32.xlu1 %v211_v4, %s544_s13  ;;  %p463_p0 = pneg %p462_p13 }
  0x21   : > { %p470_p5 = pnand %p469_p3, %p463_p0 }
  0x22   : > { %459 = vset.pattern.permute.xlu0 %v542_v3 }
  0x23   : > { %258 = vperm.xlu1 %455, %v245_v5  }
  0x27   : > { %457 = vset.pattern.permute.xlu1 %v545_v6 }
  0x28   : > { %278 = vperm.xlu1 %457, %v245_v5  }
  0x2c   : > { %458 = vset.pattern.permute.xlu1 %v542_v3 }
  0x2d   : > { %290 = vperm.xlu1 %458, %v287_v7  }
  0x8f   : > { %v238_v8 = vpop.permute.xlu1 %237  ;;  %v216_v9 = vpop.permute.xlu0 %215 }
  0x90   : > { %v218_v14 = vmul.f32 %v216_v9, %v211_v4 }
  0x93   : > { %v221_v10 = vpop.permute.xlu1 %220 }
  0x94   : > { %v224_v11 = vsel %vm223_vm0, 0.0, %v221_v10  ;;  %v227_v12 = vpop.permute.xlu0 %226 }
  0x95   : > { %v229_v13 = vmul.f32 %v227_v12, %v224_v11 }
  0x97   : > { %v232_v15 = vpop.permute.xlu1 %231  ;;  %v230_v17 = vadd.f32 %v229_v13, %v218_v14 }
  0x98   : > { %v235_v16 = vsel %vm234_vm1, %v232_v15, 0.0  ;;  %v249_v25 = vpop.permute.xlu0 %248 }
  0x99   : > { %v240_v18 = vmul.f32 %v238_v8, %v235_v16 }
  0x9b   : > { %v241_v20 = vadd.f32 %v240_v18, %v230_v17 }
  0x9d   : > { %243 = vst.msk [vmem:[#allocation2] sm:$0xf] %vm242_vm2, %v241_v20  ;;  %v269_v32 = vpop.permute.xlu0 %268 }
  0xa2   : > { %v259_v26 = vpop.permute.xlu1 %258 }
  0xa4   : > { %v244_v28 = vld [vmem:[#allocation2] sm:$0xf] }
  0xa5   : > { %v254_v29 = vrot.slane %v244_v28, %v253_v22  ;;  %v264_v30 = vrot.slane %v244_v28, %v263_v23  ;;  %v274_v31 = vrot.slane %v244_v28, %v273_v24  ;;  %v284_v35 = vrot.slane %v244_v28, %v283_v27 }
  0xa7   : > { %v255_v33 = vmul.f32 %v254_v29, %v249_v25  ;;  %v265_v34 = vmul.f32 %v264_v30, %v259_v26  ;;  %v279_v36 = vpop.permute.xlu1 %278  ;;  %v275_v38 = vmul.f32 %v274_v31, %v269_v32 }
  0xa8   : > { %v285_v40 = vmul.f32 %v284_v35, %v279_v36 }
  0xa9   : > { %v266_v37 = vadd.f32 %v265_v34, %v255_v33 }
  0xab   : > { %v276_v39 = vadd.f32 %v275_v38, %v266_v37 }
  0xac   : > { %v291_v41 = vpop.permute.xlu1 %290 }
  0xad   : > { %v286_v42 = vadd.f32 %v285_v40, %v276_v39 }
  0xaf   : > { %v293_v43 = vadd.f32 %v291_v41, %v286_v42 }
  0xb1   : > { %v294_v44 = vmax.f32 %v293_v43, 0.0 }
  0xb3   : > { %296 = vst.msk [vmem:[%s202_s29] sm:$0xff] %vm295_vm3, %v294_v44 }
  0xb4   : > { %473 = shalt.err (!%p470_p5)
}
  0xb5   : > { %s474_s12 = scalar_lea.hbm %s646_s7, 128  ;;  %s478_s21 = scalar_lea.hbm %s697_s4, 256 }
  0xb6   : > { %p475_p6 = scmp.ne.s32.totalorder %s646_s7, %s474_s12  ;;  %p479_p10 = scmp.lt.u32.totalorder %s646_s7, %s697_s4 }
  0xb7   : > { %p480_p11 = scmp.lt.u32.totalorder %s478_s21, %s474_s12  ;;  %p482_p13 = scmp.lt.u32.totalorder %s474_s12, %s646_s7 }
  0xb8   : > { %p476_p7 = pnand %p475_p6, %p612_p4 }
  0xb9   : > { %p481_p12 = por %p480_p11, %p479_p10 }
  0xba   : > { %p477_p9 = pneg %p476_p7 }
  0xbb   : > { %p483_p0 = por %p482_p13, %p481_p12 }
  0xbd   : > { %p484_p1 = pnand %p483_p0, %p477_p9 }
  0xbf   : > { %487 = shalt.err (!%p484_p1)
}
  0xc0   : > { %391 = dma.vmem_to_hbm [thread:$0]  (%p612_p4), %s648_s30, 128, %s646_s7, %s298_s8  }
  0xc1 PF: > { %p397_p2 = scmp.ge.s32.totalorder %s538_s20, 2  ;;  %s324_s26 = sand.u32 1, %s518_s15  }
  0xc2   : > { %s325_s29 = scalar_lea.sflag [#allocation4], %s324_s26 }
  0xc3   : > { %p394_p3 = pnand %p397_p2, %p619_p8 }
  0xc5   : > { %513 = dma.done.wait (!%p394_p3), %s325_s29, 128  }
  0xc6   : > { %515 = vsyncadd (!%p394_p3), %s325_s29, 4294967168  ;;  %s17_s20 = sadd.s32 1, %s538_s20   ;;  %s700_s15 = smov %s522_s16 }
  0xc7   : > { %p14_p5 = scmp.ge.s32.totalorder %s17_s20, 4   ;;  %s701_s16 = smov %s526_s17 }
  0xc8   : > { %s702_s17 = smov %s625_s28  ;;  %s703_s18 = smov %s534_s19 }
  0xc9   : > { %s704_s19 = smov %s706_s23  ;;  %16 = sbr.rel (!%p14_p5) target bundleno = 4 (0x4), region = 75 }
  0xd0   :  { %330 = vsyncpa [#allocation4], 1 }
  0xd1   :  { %332 = vsyncpa [#allocation4 + $0x1], 1 }

</bundles_post_ra>
